<compile_context>
chip_gen: v7x
topology: tpu7x:2x2x1
jax: 0.10.0
libtpu: 0.0.40
codegen_flags: <defaults>
</compile_context>

<pallas_src>
import jax
import jax.numpy as jnp
from jax.experimental import pallas as pl
from jax.experimental.pallas import tpu as pltpu


def _round_up(x, m):
    return ((x + m - 1) // m) * m


def _mlp_kernel(a_ref, i_ref, w1a_ref, w1b_ref, b1_ref, w2_ref, b2_ref, o_ref):
    # In-kernel bf16 cast: activations arrive as f32 (one 4 B/elem HBM read),
    # MXU gets native bf16 operands, accumulation stays f32.
    a = a_ref[...].astype(jnp.bfloat16)
    i = i_ref[...].astype(jnp.bfloat16)
    w1a = w1a_ref[...].astype(jnp.bfloat16)
    w1b = w1b_ref[...].astype(jnp.bfloat16)

    # Fused concat: h = concat([a, i], 1) @ W1 = a @ W1[:d1] + i @ W1[d1:]
    h = jnp.dot(a, w1a, preferred_element_type=jnp.float32)
    h = h + jnp.dot(i, w1b, preferred_element_type=jnp.float32)

    # Bias-add + ReLU in f32 on the VPU.
    h = jnp.maximum(h + b1_ref[...], 0.0)

    # Second layer fully in f32 (mem-bound kernel -> compute cost negligible,
    # keeps the result close to a pure-f32 PyTorch Generator).
    y = jnp.dot(h, w2_ref[...], preferred_element_type=jnp.float32)
    o_ref[...] = (y + b2_ref[...]).astype(o_ref.dtype)


def generator_forward(a_same, i_tail, w1, b1, w2, b2, *, tile_b=1024):
    """Generator forward.

    a_same: [B, d1], i_tail: [B, d2] with d1 + d2 == 128 (all f32).
    w1: [128, 128] (stored as [in, out]), b1: [128]
    w2: [128, out_dim] (stored as [in, out]), b2: [out_dim]
    Returns [B, out_dim] float32.
    """
    B, d1 = a_same.shape
    d2 = i_tail.shape[1]
    assert d1 + d2 == w1.shape[0] == 128
    out_dim = w2.shape[1]

    # Fused concat: split W1 along its input axis (done once, tiny).
    w1a, w1b = w1[:d1], w1[d1:]
    b1_2d = b1.reshape(1, -1).astype(jnp.float32)    # [1, 128]
    b2_2d = b2.reshape(1, -1).astype(jnp.float32)    # [1, out_dim]

    # Batch tile: multiple of 16, capped so the parallel axis has >=2 grid
    # steps when the batch allows it (v7x: 2 TensorCores per chip).
    tb = min(tile_b, _round_up(B, 16), _round_up(pl.cdiv(B, 2), 16))
    tb = max(tb, 16)
    grid = (pl.cdiv(B, tb),)   # ragged last block handled by Pallas (no pad)

    flops = 2 * B * 128 * 128 + 2 * B * 128 * out_dim
    bytes_accessed = (
        4 * (a_same.size + i_tail.size)                  # f32 activations in
        + 4 * (w1a.size + w1b.size + w2.size)            # f32 weights (resident)
        + 4 * (b1_2d.size + b2_2d.size)                  # f32 biases
        + 4 * B * out_dim                                # f32 output (unpadded)
    )

    out = pl.pallas_call(
        _mlp_kernel,
        out_shape=jax.ShapeDtypeStruct((B, out_dim), jnp.float32),
        grid=grid,
        in_specs=[
            pl.BlockSpec((tb, d1), lambda i: (i, 0)),          # a_same tile
            pl.BlockSpec((tb, d2), lambda i: (i, 0)),          # i_tail tile
            pl.BlockSpec((d1, 128), lambda i: (0, 0)),         # W1[:d1]  (resident)
            pl.BlockSpec((d2, 128), lambda i: (0, 0)),         # W1[d1:]  (resident)
            pl.BlockSpec((1, 128), lambda i: (0, 0)),          # b1       (resident)
            pl.BlockSpec((128, out_dim), lambda i: (0, 0)),    # W2       (resident)
            pl.BlockSpec((1, out_dim), lambda i: (0, 0)),      # b2       (resident)
        ],
        out_specs=pl.BlockSpec((tb, out_dim), lambda i: (i, 0)),
        compiler_params=pltpu.CompilerParams(
            dimension_semantics=("parallel",),
        ),
        cost_estimate=pl.CostEstimate(
            flops=flops, transcendentals=0, bytes_accessed=bytes_accessed),
    )(a_same, i_tail, w1a, w1b, b1_2d, w2, b2_2d)

    return out


def _init_params(key, output_dim):
    """Deterministic synthetic parameters matching nn.Linear shapes.

    PyTorch Linear(128,128): W1 [128,128], b1 [128]
    PyTorch Linear(128,out): W2 [out,128], b2 [out]
    Weights stored transposed ([in, out]) for the kernel's x @ W layout.
    """
    k1, k2, k3, k4 = jax.random.split(key, 4)
    scale1 = 1.0 / jnp.sqrt(128.0)
    w1 = jax.random.uniform(k1, (128, 128), jnp.float32, -scale1, scale1)
    b1 = jax.random.uniform(k2, (128,), jnp.float32, -scale1, scale1)
    w2 = jax.random.uniform(k3, (128, output_dim), jnp.float32, -scale1, scale1)
    b2 = jax.random.uniform(k4, (output_dim,), jnp.float32, -scale1, scale1)
    return w1, b1, w2, b2


if __name__ == "__main__":
    key = jax.random.PRNGKey(0)
    k_a, k_i, k_p = jax.random.split(key, 3)

    B = 8
    d1, d2 = 64, 64            # concat -> 128, matching Linear(128, ...)
    output_dim = 32

    a_same = jax.random.normal(k_a, (B, d1), jnp.float32)
    i_tail = jax.random.normal(k_i, (B, d2), jnp.float32)
    w1, b1, w2, b2 = _init_params(k_p, output_dim)

    out = generator_forward(a_same, i_tail, w1, b1, w2, b2)
    out = jax.block_until_ready(out)

    # Cross-check against a pure-JAX f32 reference (layer-1 operands are bf16
    # inside the kernel, accumulation and layer-2 are f32 -> tight tolerance).
    x = jnp.concatenate([a_same, i_tail], axis=1)
    ref = jnp.maximum(x @ w1 + b1, 0.0) @ w2 + b2
    assert out.shape == (B, output_dim)
    assert out.dtype == jnp.float32
    assert jnp.allclose(out, ref, atol=2e-2, rtol=2e-2)

    print("KERNEL_OK")
</pallas_src>

<mosaic_0001>
module attributes {stable_mosaic.version = 11 : i64} {
  func.func @_mlp_kernel(%arg0: i32, %arg1: memref<16x64xf32, #tpu.memory_space<vmem>>, %arg2: memref<16x64xf32, #tpu.memory_space<vmem>>, %arg3: memref<64x128xf32, #tpu.memory_space<vmem>>, %arg4: memref<64x128xf32, #tpu.memory_space<vmem>>, %arg5: memref<1x128xf32, #tpu.memory_space<vmem>>, %arg6: memref<128x32xf32, #tpu.memory_space<vmem>>, %arg7: memref<1x32xf32, #tpu.memory_space<vmem>>, %arg8: memref<16x32xf32, #tpu.memory_space<vmem>>) attributes {dimension_semantics = [#tpu.dimension_semantics<parallel>], iteration_bounds = array<i64: 1>, scalar_prefetch = 0 : i64, scratch_operands = 0 : i64, tpu.core_type = #tpu.core_type<tc>, window_params = [{transform_indices = @transform_0, window_bounds = array<i64: 16, 64>}, {transform_indices = @transform_1, window_bounds = array<i64: 16, 64>}, {pipeline_mode = #tpu.pipeline_mode<synchronous>, transform_indices = @transform_2, window_bounds = array<i64: 64, 128>}, {pipeline_mode = #tpu.pipeline_mode<synchronous>, transform_indices = @transform_3, window_bounds = array<i64: 64, 128>}, {pipeline_mode = #tpu.pipeline_mode<synchronous>, transform_indices = @transform_4, window_bounds = array<i64: 1, 128>}, {pipeline_mode = #tpu.pipeline_mode<synchronous>, transform_indices = @transform_5, window_bounds = array<i64: 128, 32>}, {pipeline_mode = #tpu.pipeline_mode<synchronous>, transform_indices = @transform_6, window_bounds = array<i64: 1, 32>}, {transform_indices = @transform_7, window_bounds = array<i64: 16, 32>}]} {
    %c0 = arith.constant 0 : index
    %c0_0 = arith.constant 0 : index
    %0 = vector.load %arg1[%c0, %c0_0] : memref<16x64xf32, #tpu.memory_space<vmem>>, vector<16x64xf32>
    %1 = arith.truncf %0 : vector<16x64xf32> to vector<16x64xbf16>
    %c0_1 = arith.constant 0 : index
    %c0_2 = arith.constant 0 : index
    %2 = vector.load %arg2[%c0_1, %c0_2] : memref<16x64xf32, #tpu.memory_space<vmem>>, vector<16x64xf32>
    %3 = arith.truncf %2 : vector<16x64xf32> to vector<16x64xbf16>
    %c0_3 = arith.constant 0 : index
    %c0_4 = arith.constant 0 : index
    %4 = vector.load %arg3[%c0_3, %c0_4] : memref<64x128xf32, #tpu.memory_space<vmem>>, vector<64x128xf32>
    %5 = arith.truncf %4 : vector<64x128xf32> to vector<64x128xbf16>
    %c0_5 = arith.constant 0 : index
    %c0_6 = arith.constant 0 : index
    %6 = vector.load %arg4[%c0_5, %c0_6] : memref<64x128xf32, #tpu.memory_space<vmem>>, vector<64x128xf32>
    %7 = arith.truncf %6 : vector<64x128xf32> to vector<64x128xbf16>
    %cst = arith.constant dense<0.000000e+00> : vector<16x128xf32>
    %8 = tpu.matmul %1, %5, %cst {dimension_numbers = #tpu.dot_dimension_numbers<[1], [0], [0], [1], [0, 0, 1, 1], [], []>} : vector<16x64xbf16>, vector<64x128xbf16>, vector<16x128xf32> -> vector<16x128xf32>
    %cst_7 = arith.constant dense<0.000000e+00> : vector<16x128xf32>
    %9 = tpu.matmul %3, %7, %cst_7 {dimension_numbers = #tpu.dot_dimension_numbers<[1], [0], [0], [1], [0, 0, 1, 1], [], []>} : vector<16x64xbf16>, vector<64x128xbf16>, vector<16x128xf32> -> vector<16x128xf32>
    %10 = arith.addf %8, %9 : vector<16x128xf32>
    %c0_8 = arith.constant 0 : index
    %c0_9 = arith.constant 0 : index
    %11 = vector.load %arg5[%c0_8, %c0_9] : memref<1x128xf32, #tpu.memory_space<vmem>>, vector<1x128xf32>
    %12 = vector.broadcast %11 : vector<1x128xf32> to vector<16x128xf32>
    %13 = arith.addf %10, %12 : vector<16x128xf32>
    %cst_10 = arith.constant 0.000000e+00 : f32
    %14 = vector.broadcast %cst_10 : f32 to vector<16x128xf32>
    %15 = arith.maximumf %13, %14 : vector<16x128xf32>
    %c0_11 = arith.constant 0 : index
    %c0_12 = arith.constant 0 : index
    %16 = vector.load %arg6[%c0_11, %c0_12] : memref<128x32xf32, #tpu.memory_space<vmem>>, vector<128x32xf32>
    %cst_13 = arith.constant dense<0.000000e+00> : vector<16x32xf32>
    %17 = tpu.matmul %15, %16, %cst_13 {dimension_numbers = #tpu.dot_dimension_numbers<[1], [0], [0], [1], [0, 0, 1, 1], [], []>} : vector<16x128xf32>, vector<128x32xf32>, vector<16x32xf32> -> vector<16x32xf32>
    %c0_14 = arith.constant 0 : index
    %c0_15 = arith.constant 0 : index
    %18 = vector.load %arg7[%c0_14, %c0_15] : memref<1x32xf32, #tpu.memory_space<vmem>>, vector<1x32xf32>
    %19 = vector.broadcast %18 : vector<1x32xf32> to vector<16x32xf32>
    %20 = arith.addf %17, %19 : vector<16x32xf32>
    %c0_16 = arith.constant 0 : index
    %c0_17 = arith.constant 0 : index
    %21 = vector.load %arg8[%c0_16, %c0_17] : memref<16x32xf32, #tpu.memory_space<vmem>>, vector<16x32xf32>
    tpu.vector_store %arg8[%c0_16, %c0_17], %20 {strides = array<i32>} : memref<16x32xf32, #tpu.memory_space<vmem>>, vector<16x32xf32>,
    return
  }
  func.func @transform_0(%arg0: i32) -> (i32, i32) {
    %c0_i32 = arith.constant 0 : i32
    %c0_i32_0 = arith.constant 0 : i32
    return %arg0, %c0_i32 : i32, i32
  }
  func.func @transform_1(%arg0: i32) -> (i32, i32) {
    %c0_i32 = arith.constant 0 : i32
    %c0_i32_0 = arith.constant 0 : i32
    return %arg0, %c0_i32 : i32, i32
  }
  func.func @transform_2(%arg0: i32) -> (i32, i32) {
    %c0_i32 = arith.constant 0 : i32
    %c0_i32_0 = arith.constant 0 : i32
    %c0_i32_1 = arith.constant 0 : i32
    return %c0_i32, %c0_i32_0 : i32, i32
  }
  func.func @transform_3(%arg0: i32) -> (i32, i32) {
    %c0_i32 = arith.constant 0 : i32
    %c0_i32_0 = arith.constant 0 : i32
    %c0_i32_1 = arith.constant 0 : i32
    return %c0_i32, %c0_i32_0 : i32, i32
  }
  func.func @transform_4(%arg0: i32) -> (i32, i32) {
    %c0_i32 = arith.constant 0 : i32
    %c0_i32_0 = arith.constant 0 : i32
    %c0_i32_1 = arith.constant 0 : i32
    return %c0_i32, %c0_i32_0 : i32, i32
  }
  func.func @transform_5(%arg0: i32) -> (i32, i32) {
    %c0_i32 = arith.constant 0 : i32
    %c0_i32_0 = arith.constant 0 : i32
    %c0_i32_1 = arith.constant 0 : i32
    return %c0_i32, %c0_i32_0 : i32, i32
  }
  func.func @transform_6(%arg0: i32) -> (i32, i32) {
    %c0_i32 = arith.constant 0 : i32
    %c0_i32_0 = arith.constant 0 : i32
    %c0_i32_1 = arith.constant 0 : i32
    return %c0_i32, %c0_i32_0 : i32, i32
  }
  func.func @transform_7(%arg0: i32) -> (i32, i32) {
    %c0_i32 = arith.constant 0 : i32
    %c0_i32_0 = arith.constant 0 : i32
    return %arg0, %c0_i32 : i32, i32
  }
}

</mosaic_0001>

<bundles_post_ra>
// kernel: tpu_custom_call.1
= control target key start
LH: loop header
LB: loop body
LE: loop exit
PB: predicated region body
PF: predicated region fallthrough
CT: control target
= control target key end

     0   :  { %12 = vsyncpa [#allocation3], 0  ;;  %v427_v2 = vmov 0.0   ;;  %vm428_vm0 = vmmov 0   ;;  %vm58_vm1 = vcmask 523264   ;;  %vm256_vm2 = vcmask 261120   ;;  %s602_s0 = inlined_call_operand.vmem [shape: f32[8,64], index: 0, kind: input, shape index: {}]   ;;  %s603_s1 = inlined_call_operand.vmem [shape: f32[8,64], index: 1, kind: input, shape index: {}]   ;;  %s604_s2 = inlined_call_operand.vmem [shape: f32[64,128], index: 2, kind: input, shape index: {}]   ;;  %s605_s3 = inlined_call_operand.vmem [shape: f32[64,128], index: 3, kind: input, shape index: {}]   ;;  %s606_s4 = inlined_call_operand.vmem [shape: f32[1,128], index: 4, kind: input, shape index: {}]   ;;  %s607_s5 = inlined_call_operand.vmem [shape: f32[128,32], index: 5, kind: input, shape index: {}]   ;;  %s608_s6 = inlined_call_operand.vmem [shape: f32[1,32], index: 6, kind: input, shape index: {}]   ;;  %s609_s7 = inlined_call_operand.hbm [shape: f32[8,32], index: 7, kind: output, shape index: {}]  }
   0x1   :  { %v46_v0 = vld [vmem:[%s605_s3] sm:$0xff]  ;;  %v47_v1 = vld [vmem:[%s605_s3 + $0x8] sm:$0xff]  ;;  %307 = vmatprep.subr.bf16.mxu1 %v427_v2  ;;  %v48_v4 = vld [vmem:[%s605_s3 + $0x10] sm:$0xff]  ;;  %315 = vmatprep.mubr.msk.bf16.mxu1 %vm428_vm0, %v427_v2 }
   0x2   :  { %v54_v3 = vpack.c.bf16 %v47_v1, %v46_v0  ;;  %v49_v5 = vld [vmem:[%s605_s3 + $0x18] sm:$0xff]  ;;  %v50_v7 = vld [vmem:[%s605_s3 + $0x20] sm:$0xff]  ;;  %v51_v8 = vld [vmem:[%s605_s3 + $0x28] sm:$0xff] }
   0x3   :  { %v55_v6 = vpack.c.bf16 %v49_v5, %v48_v4  ;;  %v56_v9 = vpack.c.bf16 %v51_v8, %v50_v7  ;;  %v158_v10 = vld [vmem:[%s607_s5] sm:$0xff]  ;;  %v159_v11 = vld [vmem:[%s607_s5 + $0x8] sm:$0xff]  ;;  %v160_v12 = vld [vmem:[%s607_s5 + $0x10] sm:$0xff] }
   0x4   :  { %308 = vmatpush3.bf16.msra.mxu1 %v54_v3  ;;  %v52_v13 = vld [vmem:[%s605_s3 + $0x30] sm:$0xff]  ;;  %v53_v14 = vld [vmem:[%s605_s3 + $0x38] sm:$0xff]  ;;  %v366_v15 = vpack.c.bf16 %v159_v11, %v158_v10  ;;  %v31_v19 = vld [vmem:[%s603_s1] sm:$0xff] }
   0x5   :  { %309 = vmatprep.subr.bf16.mxu1 %v427_v2  ;;  %v161_v16 = vld [vmem:[%s607_s5 + $0x18] sm:$0xff]  ;;  %v57_v18 = vpack.c.bf16 %v53_v14, %v52_v13  ;;  %v32_v20 = vld [vmem:[%s603_s1 + $0x8] sm:$0xff]  ;;  %v34_v21 = vld [vmem:[%s604_s2] sm:$0xff] }
   0x6   :  { %v370_v17 = vpack.c.bf16 %v161_v16, %v160_v12  ;;  %367 = vmatprep.subr.bf16.mxu0 %v366_v15  ;;  %v35_v22 = vld [vmem:[%s604_s2 + $0x8] sm:$0xff]  ;;  %v33_v23 = vpack.c.bf16 %v32_v20, %v31_v19  ;;  %v36_v25 = vld [vmem:[%s604_s2 + $0x10] sm:$0xff]  ;;  %v37_v26 = vld [vmem:[%s604_s2 + $0x18] sm:$0xff] }
   0x7   :  { %369 = vmatpush3.bf16.msra.mxu0 %v366_v15  ;;  %v42_v24 = vpack.c.bf16 %v35_v22, %v34_v21  ;;  %v43_v27 = vpack.c.bf16 %v37_v26, %v36_v25  ;;  %v38_v28 = vld [vmem:[%s604_s2 + $0x20] sm:$0xff]  ;;  %v39_v29 = vld [vmem:[%s604_s2 + $0x28] sm:$0xff]  ;;  %v40_v31 = vld [vmem:[%s604_s2 + $0x30] sm:$0xff] }
   0x8   :  { %310 = vmatpush3.bf16.msra.mxu1 %v55_v6  ;;  %371 = vmatprep.subr.bf16.mxu0 %v370_v17  ;;  %v44_v30 = vpack.c.bf16 %v39_v29, %v38_v28  ;;  %v41_v32 = vld [vmem:[%s604_s2 + $0x38] sm:$0xff]  ;;  %v28_v34 = vld [vmem:[%s602_s0] sm:$0xff]  ;;  %v29_v35 = vld [vmem:[%s602_s0 + $0x8] sm:$0xff] }
   0x9   :  { %311 = vmatprep.subr.bf16.mxu1 %v427_v2  ;;  %v45_v33 = vpack.c.bf16 %v41_v32, %v40_v31  ;;  %v30_v36 = vpack.c.bf16 %v29_v35, %v28_v34  ;;  %v162_v37 = vld [vmem:[%s607_s5 + $0x20] sm:$0xff]  ;;  %v163_v38 = vld [vmem:[%s607_s5 + $0x28] sm:$0xff]  ;;  %v164_v40 = vld [vmem:[%s607_s5 + $0x30] sm:$0xff] }
   0xa   :  { %v374_v39 = vpack.c.bf16 %v163_v38, %v162_v37  ;;  %v165_v41 = vld [vmem:[%s607_s5 + $0x38] sm:$0xff]  ;;  %v166_v43 = vld [vmem:[%s607_s5 + $0x40] sm:$0xff]  ;;  %v167_v44 = vld [vmem:[%s607_s5 + $0x48] sm:$0xff] }
   0xb   :  { %373 = vmatpush3.bf16.msra.mxu0 %v370_v17  ;;  %v378_v42 = vpack.c.bf16 %v165_v41, %v164_v40  ;;  %v382_v45 = vpack.c.bf16 %v167_v44, %v166_v43  ;;  %v168_v46 = vld [vmem:[%s607_s5 + $0x50] sm:$0xff]  ;;  %v169_v47 = vld [vmem:[%s607_s5 + $0x58] sm:$0xff]  ;;  %v170_v49 = vld [vmem:[%s607_s5 + $0x60] sm:$0xff] }
   0xc   :  { %312 = vmatpush3.bf16.msra.mxu1 %v56_v9  ;;  %375 = vmatprep.subr.bf16.mxu0 %v374_v39  ;;  %v386_v48 = vpack.c.bf16 %v169_v47, %v168_v46  ;;  %v171_v50 = vld [vmem:[%s607_s5 + $0x68] sm:$0xff]  ;;  %v172_v52 = vld [vmem:[%s607_s5 + $0x70] sm:$0xff]  ;;  %v173_v53 = vld [vmem:[%s607_s5 + $0x78] sm:$0xff] }
   0xd   :  { %313 = vmatprep.subr.bf16.mxu1 %v427_v2  ;;  %v390_v51 = vpack.c.bf16 %v171_v50, %v170_v49  ;;  %v394_v54 = vpack.c.bf16 %v173_v53, %v172_v52  ;;  %v277_v60 = vld [vmem:[%s606_s4] ss:$0 sm:$0xff] }
   0xe   :  { %v278_v6 = vld [vmem:[%s608_s6] ss:$0 sm:$0xff] }
   0xf   :  { %377 = vmatpush3.bf16.msra.mxu0 %v374_v39 }
  0x10   :  { %314 = vmatpush3.bf16.msra.mxu1 %v57_v18  ;;  %379 = vmatprep.subr.bf16.mxu0 %v378_v42 }
  0x11   :  { %319 = vmatprep.subr.bf16.mxu1 %v427_v2 }
  0x13   :  { %316 = vmatmul.mubr.msk.bf16.vlgmr.msra.gmra.mrb[0].mxu1 %vm58_vm1, %v33_v23  ;;  %381 = vmatpush3.bf16.msra.mxu0 %v378_v42 }
  0x14   :  { %320 = vmatpush3.bf16.msra.mxu1 %v42_v24  ;;  %327 = vmatprep.mubr.msk.bf16.mxu1 %vm428_vm0, %v427_v2 }
  0x15   :  { %321 = vmatprep.subr.bf16.mxu1 %v427_v2  ;;  %383 = vmatprep.subr.bf16.mxu0 %v382_v45 }
  0x17   :  { %385 = vmatpush3.bf16.msra.mxu0 %v382_v45 }
  0x18   :  { %322 = vmatpush3.bf16.msra.mxu1 %v43_v27  ;;  %387 = vmatprep.subr.bf16.mxu0 %v386_v48 }
  0x19   :  { %323 = vmatprep.subr.bf16.mxu1 %v427_v2 }
  0x1b   :  { %389 = vmatpush3.bf16.msra.mxu0 %v386_v48 }
  0x1c   :  { %324 = vmatpush3.bf16.msra.mxu1 %v44_v30  ;;  %391 = vmatprep.subr.bf16.mxu0 %v390_v51 }
  0x1d   :  { %325 = vmatprep.subr.bf16.mxu1 %v427_v2 }
  0x1f   :  { %393 = vmatpush3.bf16.msra.mxu0 %v390_v51 }
  0x20   :  { %326 = vmatpush3.bf16.msra.mxu1 %v45_v33  ;;  %395 = vmatprep.subr.bf16.mxu0 %v394_v54 }
  0x23   :  { %328 = vmatmul.mubr.msk.bf16.vlgmr.msra.gmra.mrb[4].mxu1 %vm58_vm1, %v30_v36  ;;  %397 = vmatpush3.bf16.msra.mxu0 %v394_v54 }
  0xe6   :  { %v96_v55 = vpop.f32.mrb[0].mxu1 }
  0xe7   :  { %v317_v56 = vpop.f32.mrb[1].mxu1 }
  0xe8   :  { %v99_v57 = vpop.f32.mrb[2].mxu1 }
  0xe9   :  { %v318_v58 = vpop.f32.mrb[3].mxu1 }
  0xf6   :  { %v140_v59 = vpop.f32.mrb[4].mxu1 }
  0xf7   :  { %v141_v61 = vadd.f32 %v140_v59, %v96_v55  ;;  %v329_v62 = vpop.f32.mrb[5].mxu1 }
  0xf8   :  { %v143_v63 = vpop.f32.mrb[6].mxu1 }
  0xf9   :  { %v144_v0 = vadd.f32 %v143_v63, %v99_v57  ;;  %v330_v1 = vpop.f32.mrb[7].mxu1  ;;  %v154_v2 = vadd.f32 %v277_v60, %v141_v61 }
  0xfb   :  { %v155_v3 = vadd.f32 %v277_v60, %v144_v0  ;;  %v156_v4 = vmax.f32 %v154_v2, 0.0 }
  0xfd   :  { %v157_v5 = vmax.f32 %v155_v3, 0.0  ;;  %363 = vmatprep.mubr.f32.mxu0 %v156_v4 }
  0xff   :  { %364 = vmatmul.mubr.f32.vlgmr.msra.gmra.mrb[0].mxu0 %v157_v5 }
 0x1d2   :  { %v365_v7 = vpop.f32.mrb[0].mxu0 }
 0x1d3   :  { %v253_v8 = vadd.f32 %v365_v7, %v278_v6  ;;  %v247_v9 = vpop.f32.mrb[1].mxu0 }
 0x1d4   :  { %v248_v10 = vadd.f32 %v278_v6, %v247_v9 }
 0x1d5   :  { %258 = vst.msk [vmem:[#allocation2 + $0x8] sm:$0xff] %vm256_vm2, %v253_v8 }
 0x1d6   :  { %257 = vst.msk [vmem:[#allocation2] sm:$0xff] %vm256_vm2, %v248_v10 }
 0x1d7   :  { %263 = vsyncadd [#allocation3], 128  ;;  %s429_s4 = smov [#allocation2]  }
 0x1d8   :  { %s264_s24 = sshll.u32 %s429_s4, 4  ;;  %s265_s24 = int_to_ptr.vmem [resolvable:$true] %s264_s24 }
 0x1d9   :  { %s403_s25 = scalar_lea.vmem %s265_s24, 128  ;;  %s407_s2 = scalar_lea.vmem %s265_s24, 256 }
 0x1da   :  { %p404_p0 = scmp.ne.s32.totalorder %s265_s24, %s403_s25  ;;  %p408_p1 = scmp.lt.s32.totalorder %s265_s24, %s265_s24 }
 0x1db   :  { %p409_p2 = scmp.lt.s32.totalorder %s407_s2, %s403_s25 }
 0x1dd   :  { %p410_p3 = por %p409_p2, %p408_p1 }
 0x1df   :  { %p411_p4 = pnand %p410_p3, %p404_p0 }
 0x1e1   :  { %414 = shalt.err (!%p411_p4)
}
 0x1e2   :  { %s415_s27 = scalar_lea.hbm %s609_s7, 128 }
 0x1e3   :  { %p416_p5 = scmp.ne.s32.totalorder %s609_s7, %s415_s27  ;;  %p419_p6 = scmp.lt.u32.totalorder %s415_s27, %s609_s7 }
 0x1e5   :  { %p421_p7 = pnand %p419_p6, %p416_p5 }
 0x1e7   :  { %424 = shalt.err (!%p421_p7)
}
 0x1e8   :  { %s430_s30 = smov 128   ;;  %s431_s8 = smov 8  }
 0x1e9   :  { %270 = dma.vmem_to_hbm [thread:$0]  %s265_s24, 128, %s609_s7, [#allocation3], %s430_s30, %s430_s30, %s431_s8  }
 0x1ea   :  { %425 = dma.done.wait [#allocation3], 256  }
 0x1eb   :  { %426 = vsyncadd [#allocation3], 4294967040 }
 0x1ec   :  { %274 = vsyncpa [#allocation3], 1 }

</bundles_post_ra>
